<compile_context>
chip_gen: v7x
topology: tpu7x:2x2x1
jax: 0.10.0
libtpu: 0.0.40
codegen_flags: <defaults>
</compile_context>

<pallas_src>
import jax
import jax.numpy as jnp
from jax.experimental import pallas as pl
from jax.experimental.pallas import tpu as pltpu

LANE = 128  # lane-dense width (Cout / FC widths / im2col features pad to this)


def _round_up(x, m):
    return (x + m - 1) // m * m


# ----------------------------- Pallas kernels ------------------------------

def _conv_relu_pool_kernel(x00_ref, x01_ref, x10_ref, x11_ref, w_ref, b_ref,
                           o_ref):
    # x**: (TM, CKKp) bf16 -- im2col patches of the 4 pool candidates
    # w:   (CKKp, 128) bf16, b: (1, 128) f32
    # o:   (TM, 128) bf16 = maxpool2(relu(conv(x) + b))  (lane-dense)
    w = w_ref[...]
    s = jnp.maximum(
        jnp.maximum(jnp.dot(x00_ref[...], w, preferred_element_type=jnp.float32),
                    jnp.dot(x01_ref[...], w, preferred_element_type=jnp.float32)),
        jnp.maximum(jnp.dot(x10_ref[...], w, preferred_element_type=jnp.float32),
                    jnp.dot(x11_ref[...], w, preferred_element_type=jnp.float32)))
    # max(relu(s_i + b)) == relu(max(s_i) + b): one bias add + one ReLU total.
    o_ref[...] = jnp.maximum(s + b_ref[...], 0.0).astype(o_ref.dtype)


def _fc_fused_kernel(x_ref, w1_ref, b1_ref, w2_ref, b2_ref, w3_ref, b3_ref,
                     o_ref):
    # x: (TB, 256) bf16; w*: bf16 padded to 128 cols; b*: (1, 128) f32.
    h = jnp.dot(x_ref[...], w1_ref[...],
                preferred_element_type=jnp.float32) + b1_ref[...]
    h = jnp.maximum(h, 0.0)                                   # relu3
    h = jnp.dot(h.astype(jnp.bfloat16), w2_ref[...],
                preferred_element_type=jnp.float32) + b2_ref[...]
    h = jnp.maximum(h, 0.0)                                   # relu4
    h = jnp.dot(h.astype(jnp.bfloat16), w3_ref[...],
                preferred_element_type=jnp.float32) + b3_ref[...]
    h = jnp.maximum(h, 0.0)                                   # relu5 (in spec)
    o_ref[...] = h.astype(o_ref.dtype)


# ------------------------------- wrappers -----------------------------------

def conv_relu_pool(x_nhwc, w_col, b_row, kernel_size):
    """Fused valid conv (stride 1) + bias + ReLU + maxpool(2) on the MXU.

    x_nhwc: (B, H, W, Cin); w_col: (CKKp, 128) bf16; b_row: (1, 128) f32.
    Returns (B, OH//2, OW//2, 128) bf16 (channels zero-padded past Cout).
    """
    K = kernel_size
    B, H, W, Cin = x_nhwc.shape
    OH, OW = H - K + 1, W - K + 1
    assert OH % 2 == 0 and OW % 2 == 0
    POH, POW = OH // 2, OW // 2
    CKK = Cin * K * K
    CKKp = _round_up(CKK, LANE)
    assert w_col.shape == (CKKp, LANE)

    # im2col patches; feature order (ci, ki, kj) matches torch
    # weight.reshape(Cout, -1).
    # TODO(synk): generate patches in-kernel (shifted-window accumulation over
    # a (ki, kj) grid axis) to avoid materializing the K*K-expanded patch
    # tensor in HBM.
    cols = []
    for ci in range(Cin):
        for ki in range(K):
            for kj in range(K):
                cols.append(x_nhwc[:, ki:ki + OH, kj:kj + OW, ci])
    p = jnp.stack(cols, axis=-1).astype(jnp.bfloat16)            # (B,OH,OW,CKK)
    p = jnp.pad(p, ((0, 0), (0, 0), (0, 0), (0, CKKp - CKK)))    # lane-dense

    M = B * POH * POW
    TM = 128 if M >= 128 else _round_up(M, 16)
    Mpad = _round_up(M, TM)

    cands = []
    for di in (0, 1):
        for dj in (0, 1):
            c = p[:, di::2, dj::2, :].reshape(M, CKKp)
            cands.append(jnp.pad(c, ((0, Mpad - M), (0, 0))))

    out = pl.pallas_call(
        _conv_relu_pool_kernel,
        out_shape=jax.ShapeDtypeStruct((Mpad, LANE), jnp.bfloat16),
        grid=(Mpad // TM,),
        in_specs=[pl.BlockSpec((TM, CKKp), lambda i: (i, 0)) for _ in range(4)]
        + [pl.BlockSpec((CKKp, LANE), lambda i: (0, 0)),
           pl.BlockSpec((1, LANE), lambda i: (0, 0))],
        out_specs=pl.BlockSpec((TM, LANE), lambda i: (i, 0)),
        compiler_params=pltpu.CompilerParams(
            dimension_semantics=("parallel",)),
    )(*cands, w_col, b_row)

    return out[:M].reshape(B, POH, POW, LANE)


def fc_stack(x, w1, b1, w2, b2, w3, b3):
    """Fused fc1+relu3, fc2+relu4, fc3+relu5. x: (B, 256) -> (B, 128) f32."""
    B, Kin = x.shape
    TB = 128 if B >= 128 else _round_up(B, 16)
    Bpad = _round_up(B, TB)
    xp = jnp.pad(x.astype(jnp.bfloat16), ((0, Bpad - B), (0, 0)))

    out = pl.pallas_call(
        _fc_fused_kernel,
        out_shape=jax.ShapeDtypeStruct((Bpad, LANE), jnp.float32),
        grid=(Bpad // TB,),
        in_specs=[pl.BlockSpec((TB, Kin), lambda i: (i, 0)),
                  pl.BlockSpec(w1.shape, lambda i: (0, 0)),
                  pl.BlockSpec(b1.shape, lambda i: (0, 0)),
                  pl.BlockSpec(w2.shape, lambda i: (0, 0)),
                  pl.BlockSpec(b2.shape, lambda i: (0, 0)),
                  pl.BlockSpec(w3.shape, lambda i: (0, 0)),
                  pl.BlockSpec(b3.shape, lambda i: (0, 0))],
        out_specs=pl.BlockSpec((TB, LANE), lambda i: (i, 0)),
        compiler_params=pltpu.CompilerParams(
            dimension_semantics=("parallel",)),
    )(xp, w1, b1, w2, b2, w3, b3)
    return out[:B]


# ------------------------------ LeNet model ---------------------------------

def init_params(key):
    """Torch-layout LeNet parameters with PyTorch-default-like scaling."""
    def uniform(k, shape, fan_in):
        bound = 1.0 / jnp.sqrt(float(fan_in))
        return jax.random.uniform(k, shape, jnp.float32, -bound, bound)

    ks = jax.random.split(key, 10)
    return {
        "w1": uniform(ks[0], (6, 1, 5, 5), 1 * 5 * 5),
        "b1": uniform(ks[1], (6,), 1 * 5 * 5),
        "w2": uniform(ks[2], (16, 6, 5, 5), 6 * 5 * 5),
        "b2": uniform(ks[3], (16,), 6 * 5 * 5),
        "fw1": uniform(ks[4], (120, 256), 256),   # torch Linear: (out, in)
        "fb1": uniform(ks[5], (120,), 256),
        "fw2": uniform(ks[6], (84, 120), 120),
        "fb2": uniform(ks[7], (84,), 120),
        "fw3": uniform(ks[8], (10, 84), 84),
        "fb3": uniform(ks[9], (10,), 84),
    }


def prepare_params(p):
    """One-time conversion to kernel layout: (in, out) weights zero-padded to
    lane-dense widths in bf16; biases as (1, 128) f32."""
    def pad_cols(w):
        return jnp.pad(w, ((0, 0), (0, LANE - w.shape[1])))

    def pad_rows_cols(w):
        return jnp.pad(w, ((0, LANE - w.shape[0]), (0, LANE - w.shape[1])))

    def bias_row(b):
        return jnp.pad(b, (0, LANE - b.shape[0])).reshape(1, LANE).astype(
            jnp.float32)

    def conv_w(w):
        cout, cin, k, _ = w.shape
        ckk = cin * k * k
        ckkp = _round_up(ckk, LANE)
        wc = w.reshape(cout, ckk).T                       # (CKK, Cout)
        wc = jnp.pad(wc, ((0, ckkp - ckk), (0, LANE - cout)))
        return wc.astype(jnp.bfloat16)

    # Fold torch's (c, h, w) flatten order into fc1's columns so the kernel
    # consumes our (h, w, c) NHWC flatten without a per-forward transpose.
    fw1 = p["fw1"].reshape(120, 16, 4, 4)                 # (out, c, h, w)
    fw1 = jnp.transpose(fw1, (0, 2, 3, 1)).reshape(120, 256)

    return {
        "w1": conv_w(p["w1"]), "b1": bias_row(p["b1"]),
        "w2": conv_w(p["w2"]), "b2": bias_row(p["b2"]),
        "fw1": pad_cols(fw1.T).astype(jnp.bfloat16),            # (256, 128)
        "fb1": bias_row(p["fb1"]),
        "fw2": pad_rows_cols(p["fw2"].T).astype(jnp.bfloat16),  # (128, 128)
        "fb2": bias_row(p["fb2"]),
        "fw3": pad_rows_cols(p["fw3"].T).astype(jnp.bfloat16),  # (128, 128)
        "fb3": bias_row(p["fb3"]),
    }


def lenet_forward(kp, x):
    """x: (B, 1, 28, 28) NCHW f32 -> (B, 10) f32 (relu'd fc3, per spec)."""
    B = x.shape[0]
    y = jnp.transpose(x, (0, 2, 3, 1))                    # NHWC
    y = conv_relu_pool(y, kp["w1"], kp["b1"], 5)          # (B, 12, 12, 128)
    y = y[..., :6]                                        # valid conv1 channels
    y = conv_relu_pool(y, kp["w2"], kp["b2"], 5)          # (B, 4, 4, 128)
    y = y[..., :16].reshape(B, 256)                       # (h, w, c) flatten
    y = fc_stack(y, kp["fw1"], kp["fb1"], kp["fw2"], kp["fb2"],
                 kp["fw3"], kp["fb3"])                    # (B, 128) f32
    return y[:, :10]


# --------------------- pure-JAX reference (f32, XLA) ------------------------

def lenet_reference(p, x):
    dn = ("NCHW", "OIHW", "NCHW")
    y = jax.lax.conv_general_dilated(x, p["w1"], (1, 1), "VALID",
                                     dimension_numbers=dn)
    y = jnp.maximum(y + p["b1"][None, :, None, None], 0.0)
    y = jax.lax.reduce_window(y, -jnp.inf, jax.lax.max,
                              (1, 1, 2, 2), (1, 1, 2, 2), "VALID")
    y = jax.lax.conv_general_dilated(y, p["w2"], (1, 1), "VALID",
                                     dimension_numbers=dn)
    y = jnp.maximum(y + p["b2"][None, :, None, None], 0.0)
    y = jax.lax.reduce_window(y, -jnp.inf, jax.lax.max,
                              (1, 1, 2, 2), (1, 1, 2, 2), "VALID")
    y = y.reshape(y.shape[0], -1)                         # torch (c,h,w) flatten
    y = jnp.maximum(y @ p["fw1"].T + p["fb1"], 0.0)
    y = jnp.maximum(y @ p["fw2"].T + p["fb2"], 0.0)
    y = jnp.maximum(y @ p["fw3"].T + p["fb3"], 0.0)
    return y


if __name__ == "__main__":
    key = jax.random.PRNGKey(0)
    kparam, kx = jax.random.split(key)
    raw_params = init_params(kparam)
    params = prepare_params(raw_params)
    # LeNet's fc1(256) requires 28x28 single-channel (MNIST-sized) input.
    x = jax.random.normal(kx, (2, 1, 28, 28), dtype=jnp.float32)

    out = jax.jit(lenet_forward)(params, x)
    out = jax.block_until_ready(out)
    assert out.shape == (2, 10) and out.dtype == jnp.float32
    assert bool(jnp.all(jnp.isfinite(out)))

    ref = lenet_reference(raw_params, x)
    max_err = float(jnp.max(jnp.abs(out - ref)))
    assert max_err < 0.15, f"mismatch vs reference: max |diff| = {max_err}"
    print("KERNEL_OK")
</pallas_src>

<mosaic_0001>
module attributes {stable_mosaic.version = 11 : i64} {
  func.func @_conv_relu_pool_kernel(%arg0: i32, %arg1: memref<128x128xbf16, #tpu.memory_space<vmem>>, %arg2: memref<128x128xbf16, #tpu.memory_space<vmem>>, %arg3: memref<128x128xbf16, #tpu.memory_space<vmem>>, %arg4: memref<128x128xbf16, #tpu.memory_space<vmem>>, %arg5: memref<128x128xbf16, #tpu.memory_space<vmem>>, %arg6: memref<1x128xf32, #tpu.memory_space<vmem>>, %arg7: memref<128x128xbf16, #tpu.memory_space<vmem>>) attributes {dimension_semantics = [#tpu.dimension_semantics<parallel>], iteration_bounds = array<i64: 3>, scalar_prefetch = 0 : i64, scratch_operands = 0 : i64, tpu.core_type = #tpu.core_type<tc>, window_params = [{transform_indices = @transform_0, window_bounds = array<i64: 128, 128>}, {transform_indices = @transform_1, window_bounds = array<i64: 128, 128>}, {transform_indices = @transform_2, window_bounds = array<i64: 128, 128>}, {transform_indices = @transform_3, window_bounds = array<i64: 128, 128>}, {pipeline_mode = #tpu.pipeline_mode<synchronous>, transform_indices = @transform_4, window_bounds = array<i64: 128, 128>}, {pipeline_mode = #tpu.pipeline_mode<synchronous>, transform_indices = @transform_5, window_bounds = array<i64: 1, 128>}, {transform_indices = @transform_6, window_bounds = array<i64: 128, 128>}]} {
    %c0 = arith.constant 0 : index
    %c0_0 = arith.constant 0 : index
    %0 = vector.load %arg5[%c0, %c0_0] : memref<128x128xbf16, #tpu.memory_space<vmem>>, vector<128x128xbf16>
    %c0_1 = arith.constant 0 : index
    %c0_2 = arith.constant 0 : index
    %1 = vector.load %arg1[%c0_1, %c0_2] : memref<128x128xbf16, #tpu.memory_space<vmem>>, vector<128x128xbf16>
    %cst = arith.constant dense<0.000000e+00> : vector<128x128xf32>
    %2 = tpu.matmul %1, %0, %cst {dimension_numbers = #tpu.dot_dimension_numbers<[1], [0], [0], [1], [0, 0, 1, 1], [], []>} : vector<128x128xbf16>, vector<128x128xbf16>, vector<128x128xf32> -> vector<128x128xf32>
    %c0_3 = arith.constant 0 : index
    %c0_4 = arith.constant 0 : index
    %3 = vector.load %arg2[%c0_3, %c0_4] : memref<128x128xbf16, #tpu.memory_space<vmem>>, vector<128x128xbf16>
    %cst_5 = arith.constant dense<0.000000e+00> : vector<128x128xf32>
    %4 = tpu.matmul %3, %0, %cst_5 {dimension_numbers = #tpu.dot_dimension_numbers<[1], [0], [0], [1], [0, 0, 1, 1], [], []>} : vector<128x128xbf16>, vector<128x128xbf16>, vector<128x128xf32> -> vector<128x128xf32>
    %5 = arith.maximumf %2, %4 : vector<128x128xf32>
    %c0_6 = arith.constant 0 : index
    %c0_7 = arith.constant 0 : index
    %6 = vector.load %arg3[%c0_6, %c0_7] : memref<128x128xbf16, #tpu.memory_space<vmem>>, vector<128x128xbf16>
    %cst_8 = arith.constant dense<0.000000e+00> : vector<128x128xf32>
    %7 = tpu.matmul %6, %0, %cst_8 {dimension_numbers = #tpu.dot_dimension_numbers<[1], [0], [0], [1], [0, 0, 1, 1], [], []>} : vector<128x128xbf16>, vector<128x128xbf16>, vector<128x128xf32> -> vector<128x128xf32>
    %c0_9 = arith.constant 0 : index
    %c0_10 = arith.constant 0 : index
    %8 = vector.load %arg4[%c0_9, %c0_10] : memref<128x128xbf16, #tpu.memory_space<vmem>>, vector<128x128xbf16>
    %cst_11 = arith.constant dense<0.000000e+00> : vector<128x128xf32>
    %9 = tpu.matmul %8, %0, %cst_11 {dimension_numbers = #tpu.dot_dimension_numbers<[1], [0], [0], [1], [0, 0, 1, 1], [], []>} : vector<128x128xbf16>, vector<128x128xbf16>, vector<128x128xf32> -> vector<128x128xf32>
    %10 = arith.maximumf %7, %9 : vector<128x128xf32>
    %11 = arith.maximumf %5, %10 : vector<128x128xf32>
    %c0_12 = arith.constant 0 : index
    %c0_13 = arith.constant 0 : index
    %12 = vector.load %arg6[%c0_12, %c0_13] : memref<1x128xf32, #tpu.memory_space<vmem>>, vector<1x128xf32>
    %13 = vector.broadcast %12 : vector<1x128xf32> to vector<128x128xf32>
    %14 = arith.addf %11, %13 : vector<128x128xf32>
    %cst_14 = arith.constant 0.000000e+00 : f32
    %15 = vector.broadcast %cst_14 : f32 to vector<128x128xf32>
    %16 = arith.maximumf %14, %15 : vector<128x128xf32>
    %17 = arith.truncf %16 : vector<128x128xf32> to vector<128x128xbf16>
    %c0_15 = arith.constant 0 : index
    %c0_16 = arith.constant 0 : index
    %18 = vector.load %arg7[%c0_15, %c0_16] : memref<128x128xbf16, #tpu.memory_space<vmem>>, vector<128x128xbf16>
    tpu.vector_store %arg7[%c0_15, %c0_16], %17 {strides = array<i32>} : memref<128x128xbf16, #tpu.memory_space<vmem>>, vector<128x128xbf16>,
    return
  }
  func.func @transform_0(%arg0: i32) -> (i32, i32) {
    %c0_i32 = arith.constant 0 : i32
    %c0_i32_0 = arith.constant 0 : i32
    return %arg0, %c0_i32 : i32, i32
  }
  func.func @transform_1(%arg0: i32) -> (i32, i32) {
    %c0_i32 = arith.constant 0 : i32
    %c0_i32_0 = arith.constant 0 : i32
    return %arg0, %c0_i32 : i32, i32
  }
  func.func @transform_2(%arg0: i32) -> (i32, i32) {
    %c0_i32 = arith.constant 0 : i32
    %c0_i32_0 = arith.constant 0 : i32
    return %arg0, %c0_i32 : i32, i32
  }
  func.func @transform_3(%arg0: i32) -> (i32, i32) {
    %c0_i32 = arith.constant 0 : i32
    %c0_i32_0 = arith.constant 0 : i32
    return %arg0, %c0_i32 : i32, i32
  }
  func.func @transform_4(%arg0: i32) -> (i32, i32) {
    %c0_i32 = arith.constant 0 : i32
    %c0_i32_0 = arith.constant 0 : i32
    %c0_i32_1 = arith.constant 0 : i32
    return %c0_i32, %c0_i32_0 : i32, i32
  }
  func.func @transform_5(%arg0: i32) -> (i32, i32) {
    %c0_i32 = arith.constant 0 : i32
    %c0_i32_0 = arith.constant 0 : i32
    %c0_i32_1 = arith.constant 0 : i32
    return %c0_i32, %c0_i32_0 : i32, i32
  }
  func.func @transform_6(%arg0: i32) -> (i32, i32) {
    %c0_i32 = arith.constant 0 : i32
    %c0_i32_0 = arith.constant 0 : i32
    return %arg0, %c0_i32 : i32, i32
  }
}

module attributes {stable_mosaic.version = 11 : i64} {
  func.func @_conv_relu_pool_kernel(%arg0: i32, %arg1: memref<32x256xbf16, #tpu.memory_space<vmem>>, %arg2: memref<32x256xbf16, #tpu.memory_space<vmem>>, %arg3: memref<32x256xbf16, #tpu.memory_space<vmem>>, %arg4: memref<32x256xbf16, #tpu.memory_space<vmem>>, %arg5: memref<256x128xbf16, #tpu.memory_space<vmem>>, %arg6: memref<1x128xf32, #tpu.memory_space<vmem>>, %arg7: memref<32x128xbf16, #tpu.memory_space<vmem>>) attributes {dimension_semantics = [#tpu.dimension_semantics<parallel>], iteration_bounds = array<i64: 1>, scalar_prefetch = 0 : i64, scratch_operands = 0 : i64, tpu.core_type = #tpu.core_type<tc>, window_params = [{transform_indices = @transform_0, window_bounds = array<i64: 32, 256>}, {transform_indices = @transform_1, window_bounds = array<i64: 32, 256>}, {transform_indices = @transform_2, window_bounds = array<i64: 32, 256>}, {transform_indices = @transform_3, window_bounds = array<i64: 32, 256>}, {pipeline_mode = #tpu.pipeline_mode<synchronous>, transform_indices = @transform_4, window_bounds = array<i64: 256, 128>}, {pipeline_mode = #tpu.pipeline_mode<synchronous>, transform_indices = @transform_5, window_bounds = array<i64: 1, 128>}, {transform_indices = @transform_6, window_bounds = array<i64: 32, 128>}]} {
    %c0 = arith.constant 0 : index
    %c0_0 = arith.constant 0 : index
    %0 = vector.load %arg5[%c0, %c0_0] : memref<256x128xbf16, #tpu.memory_space<vmem>>, vector<256x128xbf16>
    %c0_1 = arith.constant 0 : index
    %c0_2 = arith.constant 0 : index
    %1 = vector.load %arg1[%c0_1, %c0_2] : memref<32x256xbf16, #tpu.memory_space<vmem>>, vector<32x256xbf16>
    %cst = arith.constant dense<0.000000e+00> : vector<32x128xf32>
    %2 = tpu.matmul %1, %0, %cst {dimension_numbers = #tpu.dot_dimension_numbers<[1], [0], [0], [1], [0, 0, 1, 1], [], []>} : vector<32x256xbf16>, vector<256x128xbf16>, vector<32x128xf32> -> vector<32x128xf32>
    %c0_3 = arith.constant 0 : index
    %c0_4 = arith.constant 0 : index
    %3 = vector.load %arg2[%c0_3, %c0_4] : memref<32x256xbf16, #tpu.memory_space<vmem>>, vector<32x256xbf16>
    %cst_5 = arith.constant dense<0.000000e+00> : vector<32x128xf32>
    %4 = tpu.matmul %3, %0, %cst_5 {dimension_numbers = #tpu.dot_dimension_numbers<[1], [0], [0], [1], [0, 0, 1, 1], [], []>} : vector<32x256xbf16>, vector<256x128xbf16>, vector<32x128xf32> -> vector<32x128xf32>
    %5 = arith.maximumf %2, %4 : vector<32x128xf32>
    %c0_6 = arith.constant 0 : index
    %c0_7 = arith.constant 0 : index
    %6 = vector.load %arg3[%c0_6, %c0_7] : memref<32x256xbf16, #tpu.memory_space<vmem>>, vector<32x256xbf16>
    %cst_8 = arith.constant dense<0.000000e+00> : vector<32x128xf32>
    %7 = tpu.matmul %6, %0, %cst_8 {dimension_numbers = #tpu.dot_dimension_numbers<[1], [0], [0], [1], [0, 0, 1, 1], [], []>} : vector<32x256xbf16>, vector<256x128xbf16>, vector<32x128xf32> -> vector<32x128xf32>
    %c0_9 = arith.constant 0 : index
    %c0_10 = arith.constant 0 : index
    %8 = vector.load %arg4[%c0_9, %c0_10] : memref<32x256xbf16, #tpu.memory_space<vmem>>, vector<32x256xbf16>
    %cst_11 = arith.constant dense<0.000000e+00> : vector<32x128xf32>
    %9 = tpu.matmul %8, %0, %cst_11 {dimension_numbers = #tpu.dot_dimension_numbers<[1], [0], [0], [1], [0, 0, 1, 1], [], []>} : vector<32x256xbf16>, vector<256x128xbf16>, vector<32x128xf32> -> vector<32x128xf32>
    %10 = arith.maximumf %7, %9 : vector<32x128xf32>
    %11 = arith.maximumf %5, %10 : vector<32x128xf32>
    %c0_12 = arith.constant 0 : index
    %c0_13 = arith.constant 0 : index
    %12 = vector.load %arg6[%c0_12, %c0_13] : memref<1x128xf32, #tpu.memory_space<vmem>>, vector<1x128xf32>
    %13 = vector.broadcast %12 : vector<1x128xf32> to vector<32x128xf32>
    %14 = arith.addf %11, %13 : vector<32x128xf32>
    %cst_14 = arith.constant 0.000000e+00 : f32
    %15 = vector.broadcast %cst_14 : f32 to vector<32x128xf32>
    %16 = arith.maximumf %14, %15 : vector<32x128xf32>
    %17 = arith.truncf %16 : vector<32x128xf32> to vector<32x128xbf16>
    %c0_15 = arith.constant 0 : index
    %c0_16 = arith.constant 0 : index
    %18 = vector.load %arg7[%c0_15, %c0_16] : memref<32x128xbf16, #tpu.memory_space<vmem>>, vector<32x128xbf16>
    tpu.vector_store %arg7[%c0_15, %c0_16], %17 {strides = array<i32>} : memref<32x128xbf16, #tpu.memory_space<vmem>>, vector<32x128xbf16>,
    return
  }
  func.func @transform_0(%arg0: i32) -> (i32, i32) {
    %c0_i32 = arith.constant 0 : i32
    %c0_i32_0 = arith.constant 0 : i32
    return %arg0, %c0_i32 : i32, i32
  }
  func.func @transform_1(%arg0: i32) -> (i32, i32) {
    %c0_i32 = arith.constant 0 : i32
    %c0_i32_0 = arith.constant 0 : i32
    return %arg0, %c0_i32 : i32, i32
  }
  func.func @transform_2(%arg0: i32) -> (i32, i32) {
    %c0_i32 = arith.constant 0 : i32
    %c0_i32_0 = arith.constant 0 : i32
    return %arg0, %c0_i32 : i32, i32
  }
  func.func @transform_3(%arg0: i32) -> (i32, i32) {
    %c0_i32 = arith.constant 0 : i32
    %c0_i32_0 = arith.constant 0 : i32
    return %arg0, %c0_i32 : i32, i32
  }
  func.func @transform_4(%arg0: i32) -> (i32, i32) {
    %c0_i32 = arith.constant 0 : i32
    %c0_i32_0 = arith.constant 0 : i32
    %c0_i32_1 = arith.constant 0 : i32
    return %c0_i32, %c0_i32_0 : i32, i32
  }
  func.func @transform_5(%arg0: i32) -> (i32, i32) {
    %c0_i32 = arith.constant 0 : i32
    %c0_i32_0 = arith.constant 0 : i32
    %c0_i32_1 = arith.constant 0 : i32
    return %c0_i32, %c0_i32_0 : i32, i32
  }
  func.func @transform_6(%arg0: i32) -> (i32, i32) {
    %c0_i32 = arith.constant 0 : i32
    %c0_i32_0 = arith.constant 0 : i32
    return %arg0, %c0_i32 : i32, i32
  }
}

module attributes {stable_mosaic.version = 11 : i64} {
  func.func @_fc_fused_kernel(%arg0: i32, %arg1: memref<16x256xbf16, #tpu.memory_space<vmem>>, %arg2: memref<256x128xbf16, #tpu.memory_space<vmem>>, %arg3: memref<1x128xf32, #tpu.memory_space<vmem>>, %arg4: memref<128x128xbf16, #tpu.memory_space<vmem>>, %arg5: memref<1x128xf32, #tpu.memory_space<vmem>>, %arg6: memref<128x128xbf16, #tpu.memory_space<vmem>>, %arg7: memref<1x128xf32, #tpu.memory_space<vmem>>, %arg8: memref<16x128xf32, #tpu.memory_space<vmem>>) attributes {dimension_semantics = [#tpu.dimension_semantics<parallel>], iteration_bounds = array<i64: 1>, scalar_prefetch = 0 : i64, scratch_operands = 0 : i64, tpu.core_type = #tpu.core_type<tc>, window_params = [{transform_indices = @transform_0, window_bounds = array<i64: 16, 256>}, {pipeline_mode = #tpu.pipeline_mode<synchronous>, transform_indices = @transform_1, window_bounds = array<i64: 256, 128>}, {pipeline_mode = #tpu.pipeline_mode<synchronous>, transform_indices = @transform_2, window_bounds = array<i64: 1, 128>}, {pipeline_mode = #tpu.pipeline_mode<synchronous>, transform_indices = @transform_3, window_bounds = array<i64: 128, 128>}, {pipeline_mode = #tpu.pipeline_mode<synchronous>, transform_indices = @transform_4, window_bounds = array<i64: 1, 128>}, {pipeline_mode = #tpu.pipeline_mode<synchronous>, transform_indices = @transform_5, window_bounds = array<i64: 128, 128>}, {pipeline_mode = #tpu.pipeline_mode<synchronous>, transform_indices = @transform_6, window_bounds = array<i64: 1, 128>}, {transform_indices = @transform_7, window_bounds = array<i64: 16, 128>}]} {
    %c0 = arith.constant 0 : index
    %c0_0 = arith.constant 0 : index
    %0 = vector.load %arg1[%c0, %c0_0] : memref<16x256xbf16, #tpu.memory_space<vmem>>, vector<16x256xbf16>
    %c0_1 = arith.constant 0 : index
    %c0_2 = arith.constant 0 : index
    %1 = vector.load %arg2[%c0_1, %c0_2] : memref<256x128xbf16, #tpu.memory_space<vmem>>, vector<256x128xbf16>
    %cst = arith.constant dense<0.000000e+00> : vector<16x128xf32>
    %2 = tpu.matmul %0, %1, %cst {dimension_numbers = #tpu.dot_dimension_numbers<[1], [0], [0], [1], [0, 0, 1, 1], [], []>} : vector<16x256xbf16>, vector<256x128xbf16>, vector<16x128xf32> -> vector<16x128xf32>
    %c0_3 = arith.constant 0 : index
    %c0_4 = arith.constant 0 : index
    %3 = vector.load %arg3[%c0_3, %c0_4] : memref<1x128xf32, #tpu.memory_space<vmem>>, vector<1x128xf32>
    %4 = vector.broadcast %3 : vector<1x128xf32> to vector<16x128xf32>
    %5 = arith.addf %2, %4 : vector<16x128xf32>
    %cst_5 = arith.constant 0.000000e+00 : f32
    %6 = vector.broadcast %cst_5 : f32 to vector<16x128xf32>
    %7 = arith.maximumf %5, %6 : vector<16x128xf32>
    %8 = arith.truncf %7 : vector<16x128xf32> to vector<16x128xbf16>
    %c0_6 = arith.constant 0 : index
    %c0_7 = arith.constant 0 : index
    %9 = vector.load %arg4[%c0_6, %c0_7] : memref<128x128xbf16, #tpu.memory_space<vmem>>, vector<128x128xbf16>
    %cst_8 = arith.constant dense<0.000000e+00> : vector<16x128xf32>
    %10 = tpu.matmul %8, %9, %cst_8 {dimension_numbers = #tpu.dot_dimension_numbers<[1], [0], [0], [1], [0, 0, 1, 1], [], []>} : vector<16x128xbf16>, vector<128x128xbf16>, vector<16x128xf32> -> vector<16x128xf32>
    %c0_9 = arith.constant 0 : index
    %c0_10 = arith.constant 0 : index
    %11 = vector.load %arg5[%c0_9, %c0_10] : memref<1x128xf32, #tpu.memory_space<vmem>>, vector<1x128xf32>
    %12 = vector.broadcast %11 : vector<1x128xf32> to vector<16x128xf32>
    %13 = arith.addf %10, %12 : vector<16x128xf32>
    %cst_11 = arith.constant 0.000000e+00 : f32
    %14 = vector.broadcast %cst_11 : f32 to vector<16x128xf32>
    %15 = arith.maximumf %13, %14 : vector<16x128xf32>
    %16 = arith.truncf %15 : vector<16x128xf32> to vector<16x128xbf16>
    %c0_12 = arith.constant 0 : index
    %c0_13 = arith.constant 0 : index
    %17 = vector.load %arg6[%c0_12, %c0_13] : memref<128x128xbf16, #tpu.memory_space<vmem>>, vector<128x128xbf16>
    %cst_14 = arith.constant dense<0.000000e+00> : vector<16x128xf32>
    %18 = tpu.matmul %16, %17, %cst_14 {dimension_numbers = #tpu.dot_dimension_numbers<[1], [0], [0], [1], [0, 0, 1, 1], [], []>} : vector<16x128xbf16>, vector<128x128xbf16>, vector<16x128xf32> -> vector<16x128xf32>
    %c0_15 = arith.constant 0 : index
    %c0_16 = arith.constant 0 : index
    %19 = vector.load %arg7[%c0_15, %c0_16] : memref<1x128xf32, #tpu.memory_space<vmem>>, vector<1x128xf32>
    %20 = vector.broadcast %19 : vector<1x128xf32> to vector<16x128xf32>
    %21 = arith.addf %18, %20 : vector<16x128xf32>
    %cst_17 = arith.constant 0.000000e+00 : f32
    %22 = vector.broadcast %cst_17 : f32 to vector<16x128xf32>
    %23 = arith.maximumf %21, %22 : vector<16x128xf32>
    %c0_18 = arith.constant 0 : index
    %c0_19 = arith.constant 0 : index
    %24 = vector.load %arg8[%c0_18, %c0_19] : memref<16x128xf32, #tpu.memory_space<vmem>>, vector<16x128xf32>
    tpu.vector_store %arg8[%c0_18, %c0_19], %23 {strides = array<i32>} : memref<16x128xf32, #tpu.memory_space<vmem>>, vector<16x128xf32>,
    return
  }
  func.func @transform_0(%arg0: i32) -> (i32, i32) {
    %c0_i32 = arith.constant 0 : i32
    %c0_i32_0 = arith.constant 0 : i32
    return %arg0, %c0_i32 : i32, i32
  }
  func.func @transform_1(%arg0: i32) -> (i32, i32) {
    %c0_i32 = arith.constant 0 : i32
    %c0_i32_0 = arith.constant 0 : i32
    %c0_i32_1 = arith.constant 0 : i32
    return %c0_i32, %c0_i32_0 : i32, i32
  }
  func.func @transform_2(%arg0: i32) -> (i32, i32) {
    %c0_i32 = arith.constant 0 : i32
    %c0_i32_0 = arith.constant 0 : i32
    %c0_i32_1 = arith.constant 0 : i32
    return %c0_i32, %c0_i32_0 : i32, i32
  }
  func.func @transform_3(%arg0: i32) -> (i32, i32) {
    %c0_i32 = arith.constant 0 : i32
    %c0_i32_0 = arith.constant 0 : i32
    %c0_i32_1 = arith.constant 0 : i32
    return %c0_i32, %c0_i32_0 : i32, i32
  }
  func.func @transform_4(%arg0: i32) -> (i32, i32) {
    %c0_i32 = arith.constant 0 : i32
    %c0_i32_0 = arith.constant 0 : i32
    %c0_i32_1 = arith.constant 0 : i32
    return %c0_i32, %c0_i32_0 : i32, i32
  }
  func.func @transform_5(%arg0: i32) -> (i32, i32) {
    %c0_i32 = arith.constant 0 : i32
    %c0_i32_0 = arith.constant 0 : i32
    %c0_i32_1 = arith.constant 0 : i32
    return %c0_i32, %c0_i32_0 : i32, i32
  }
  func.func @transform_6(%arg0: i32) -> (i32, i32) {
    %c0_i32 = arith.constant 0 : i32
    %c0_i32_0 = arith.constant 0 : i32
    %c0_i32_1 = arith.constant 0 : i32
    return %c0_i32, %c0_i32_0 : i32, i32
  }
  func.func @transform_7(%arg0: i32) -> (i32, i32) {
    %c0_i32 = arith.constant 0 : i32
    %c0_i32_0 = arith.constant 0 : i32
    return %arg0, %c0_i32 : i32, i32
  }
}

</mosaic_0001>

<bundles_post_ra>
// kernel: lenet_forward.3
= control target key start
LH: loop header
LB: loop body
LE: loop exit
PB: predicated region body
PF: predicated region fallthrough
CT: control target
= control target key end

     0   :  { %s1709_s21 = smov 0   ;;  %s2015_s0 = inlined_call_operand.vmem [shape: bf16[384,128], index: 0, kind: input, shape index: {}]   ;;  %s2016_s1 = inlined_call_operand.vmem [shape: bf16[384,128], index: 1, kind: input, shape index: {}]   ;;  %s2017_s2 = inlined_call_operand.vmem [shape: bf16[384,128], index: 2, kind: input, shape index: {}]   ;;  %s2018_s3 = inlined_call_operand.vmem [shape: bf16[384,128], index: 3, kind: input, shape index: {}]   ;;  %s2019_s4 = inlined_call_operand.vmem [shape: bf16[128,128], index: 4, kind: input, shape index: {}]   ;;  %s2020_s5 = inlined_call_operand.vmem [shape: f32[1,128], index: 5, kind: input, shape index: {}]   ;;  %s2021_s6 = inlined_call_operand.vmem [shape: bf16[384,128], index: 6, kind: output, shape index: {}]  }
   0x1 LB: > { %s1289_s22 = sadd.s32 4294967295, %s1672_s21   ;;  %p1293_p0 = scmp.ge.s32.totalorder %s1672_s21, 1  ;;  %s1672_s21 = sphi %s1709_s21, %s16_s21  }
   0x2   : > { %p246_p1 = scmp.lt.s32.totalorder %s1672_s21, 4 }
   0x4   : > { %p247_p2 = pnand %p1293_p0, %p246_p1 }
   0x5   : > { %v1626_v0 = vld [vmem:[%s2019_s4] sm:$0xff] (!%p247_p2)   ;;  %s1294_s25 = sshll.u32 (!%p247_p2), %s1289_s22, 4  ;;  %v1723_v1 = vld [vmem:[%s2019_s4 + $0x8] sm:$0xff] (!%p247_p2)   ;;  %v1730_v2 = vld [vmem:[%s2019_s4 + $0x10] sm:$0xff] (!%p247_p2)  }
   0x6   : > { %250 = sbr.rel (%p247_p2) target bundleno = 320 (0x140), region = 44  ;;  %p292_p3 = scmp.lt.s32.totalorder (!%p247_p2), %s1294_s25, 47  ;;  %1490 = vmatprep.subr.bf16.mxu0 (!%p247_p2), %v1626_v0  ;;  %1522 = vmatprep.subr.bf16.mxu1 (!%p247_p2), %v1626_v0  ;;  %v1751_v3 = vld [vmem:[%s2019_s4 + $0x18] sm:$0xff] (!%p247_p2)   ;;  %v1764_v6 = vld [vmem:[%s2019_s4 + $0x20] sm:$0xff] (!%p247_p2)   ;;  %v1773_v7 = vld [vmem:[%s2019_s4 + $0x28] sm:$0xff] (!%p247_p2)  }
   0x7   : > { %1491 = vmatpush3.bf16.msra.mxu0 (!%p247_p2), %v1626_v0  ;;  %1523 = vmatpush3.bf16.msra.mxu1 (!%p247_p2), %v1626_v0  ;;  %v1782_v8 = vld [vmem:[%s2019_s4 + $0x30] sm:$0xff] (!%p247_p2)   ;;  %v1797_v9 = vld [vmem:[%s2019_s4 + $0x38] sm:$0xff] (!%p247_p2)  }
   0x8   : > { %1492 = vmatprep.subr.bf16.mxu0 (!%p247_p2), %v1723_v1  ;;  %1524 = vmatprep.subr.bf16.mxu1 (!%p247_p2), %v1723_v1 }
   0xb   : > { %1493 = vmatpush3.bf16.msra.mxu0 (!%p247_p2), %v1723_v1  ;;  %1525 = vmatpush3.bf16.msra.mxu1 (!%p247_p2), %v1723_v1 }
   0xc   : > { %1494 = vmatprep.subr.bf16.mxu0 (!%p247_p2), %v1730_v2  ;;  %1526 = vmatprep.subr.bf16.mxu1 (!%p247_p2), %v1730_v2 }
   0xd   : > { %s2023_s25 = smov (!%p292_p3, %s1294_s25), 47 }
   0xe   : > { %s1732_s30 = sshll.u32 %s2023_s25, 2 }
   0xf   : > { %s1738_s9 = scalar_lea.vmem %s2015_s0, %s1732_s30  ;;  %s1744_s12 = scalar_lea.vmem %s2016_s1, %s1732_s30  ;;  %1495 = vmatpush3.bf16.msra.mxu0 %v1730_v2  ;;  %1527 = vmatpush3.bf16.msra.mxu1 %v1730_v2 }
  0x10   : > { %v1634_v4 = vld [vmem:[%s1738_s9] sm:$0xff]   ;;  %1496 = vmatprep.subr.bf16.mxu0 %v1751_v3  ;;  %1528 = vmatprep.subr.bf16.mxu1 %v1751_v3  ;;  %s1790_s24 = scalar_lea.vmem %s2017_s2, %s1732_s30  ;;  %s1803_s29 = scalar_lea.vmem %s2018_s3, %s1732_s30  ;;  %v1636_v10 = vld [vmem:[%s1738_s9 + $0x8] sm:$0xff]   ;;  %v1638_v12 = vld [vmem:[%s1738_s9 + $0x10] sm:$0xff]  }
  0x11   : > { %v1635_v5 = vld [vmem:[%s1744_s12] sm:$0xff]   ;;  %1506 = vmatprep.mubr.bf16.mxu0 %v1634_v4  ;;  %v1637_v11 = vld [vmem:[%s1744_s12 + $0x8] sm:$0xff]   ;;  %v1639_v13 = vld [vmem:[%s1744_s12 + $0x10] sm:$0xff]   ;;  %s1954_s11 = scalar_lea.vmem %s2021_s6, %s1732_s30 }
  0x12   : > { %1538 = vmatprep.mubr.bf16.mxu1 %v1635_v5  ;;  %v1640_v14 = vld [vmem:[%s1738_s9 + $0x18] sm:$0xff]   ;;  %v1642_v16 = vld [vmem:[%s1738_s9 + $0x20] sm:$0xff]   ;;  %v1644_v18 = vld [vmem:[%s1738_s9 + $0x28] sm:$0xff]  }
  0x13   : > { %1497 = vmatpush3.bf16.msra.mxu0 %v1751_v3  ;;  %1529 = vmatpush3.bf16.msra.mxu1 %v1751_v3  ;;  %v1641_v15 = vld [vmem:[%s1744_s12 + $0x18] sm:$0xff]   ;;  %v1643_v17 = vld [vmem:[%s1744_s12 + $0x20] sm:$0xff]   ;;  %v1645_v19 = vld [vmem:[%s1744_s12 + $0x28] sm:$0xff]  }
  0x14   : > { %1498 = vmatprep.subr.bf16.mxu0 %v1764_v6  ;;  %1530 = vmatprep.subr.bf16.mxu1 %v1764_v6  ;;  %v1646_v20 = vld [vmem:[%s1738_s9 + $0x30] sm:$0xff]   ;;  %v1648_v22 = vld [vmem:[%s1738_s9 + $0x38] sm:$0xff]   ;;  %v1650_v24 = vld [vmem:[%s1790_s24] sm:$0xff]  }
  0x15   : > { %v1647_v21 = vld [vmem:[%s1744_s12 + $0x30] sm:$0xff]   ;;  %v1649_v23 = vld [vmem:[%s1744_s12 + $0x38] sm:$0xff]   ;;  %v1651_v25 = vld [vmem:[%s1803_s29] sm:$0xff]  }
  0x16   : > { %v1652_v26 = vld [vmem:[%s1790_s24 + $0x8] sm:$0xff]   ;;  %v1654_v28 = vld [vmem:[%s1790_s24 + $0x10] sm:$0xff]   ;;  %v1656_v30 = vld [vmem:[%s1790_s24 + $0x18] sm:$0xff]  }
  0x17   : > { %1499 = vmatpush3.bf16.msra.mxu0 %v1764_v6  ;;  %1531 = vmatpush3.bf16.msra.mxu1 %v1764_v6  ;;  %v1653_v27 = vld [vmem:[%s1803_s29 + $0x8] sm:$0xff]   ;;  %v1655_v29 = vld [vmem:[%s1803_s29 + $0x10] sm:$0xff]   ;;  %v1657_v31 = vld [vmem:[%s1803_s29 + $0x18] sm:$0xff]  }
  0x18   : > { %1500 = vmatprep.subr.bf16.mxu0 %v1773_v7  ;;  %1532 = vmatprep.subr.bf16.mxu1 %v1773_v7  ;;  %v1658_v32 = vld [vmem:[%s1790_s24 + $0x20] sm:$0xff]   ;;  %v1660_v34 = vld [vmem:[%s1790_s24 + $0x28] sm:$0xff]   ;;  %v1662_v36 = vld [vmem:[%s1790_s24 + $0x30] sm:$0xff]  }
  0x19   : > { %v1659_v33 = vld [vmem:[%s1803_s29 + $0x20] sm:$0xff]   ;;  %v1661_v35 = vld [vmem:[%s1803_s29 + $0x28] sm:$0xff]   ;;  %v1663_v37 = vld [vmem:[%s1803_s29 + $0x30] sm:$0xff]  }
  0x1a   : > { %v1664_v38 = vld [vmem:[%s1790_s24 + $0x38] sm:$0xff]  }
  0x1b   : > { %1501 = vmatpush3.bf16.msra.mxu0 %v1773_v7  ;;  %1533 = vmatpush3.bf16.msra.mxu1 %v1773_v7  ;;  %v1665_v39 = vld [vmem:[%s1803_s29 + $0x38] sm:$0xff]  }
  0x1c   : > { %1502 = vmatprep.subr.bf16.mxu0 %v1782_v8  ;;  %1534 = vmatprep.subr.bf16.mxu1 %v1782_v8 }
  0x1f   : > { %1503 = vmatpush3.bf16.msra.mxu0 %v1782_v8  ;;  %1535 = vmatpush3.bf16.msra.mxu1 %v1782_v8 }
  0x20   : > { %1504 = vmatprep.subr.bf16.mxu0 %v1797_v9  ;;  %1536 = vmatprep.subr.bf16.mxu1 %v1797_v9 }
  0x23   : > { %1505 = vmatpush3.bf16.msra.mxu0 %v1797_v9  ;;  %1537 = vmatpush3.bf16.msra.mxu1 %v1797_v9 }
  0x24   : > { %1554 = vmatprep.subr.bf16.mxu0 %v1626_v0  ;;  %1586 = vmatprep.subr.bf16.mxu1 %v1626_v0 }
  0x26   : > { %1507 = vmatmul.mubr.bf16.vlgmr.msra.gmra.mrb[0].mxu0 %v1636_v10  ;;  %1539 = vmatmul.mubr.bf16.vlgmr.msra.gmra.mrb[0].mxu1 %v1637_v11 }
  0x27   : > { %1555 = vmatpush3.bf16.msra.mxu0 %v1626_v0  ;;  %1587 = vmatpush3.bf16.msra.mxu1 %v1626_v0 }
  0x28   : > { %1556 = vmatprep.subr.bf16.mxu0 %v1723_v1  ;;  %1588 = vmatprep.subr.bf16.mxu1 %v1723_v1 }
  0x29   : > { %1510 = vmatprep.mubr.bf16.mxu0 %v1638_v12  ;;  %1542 = vmatprep.mubr.bf16.mxu1 %v1639_v13 }
  0x2b   : > { %1557 = vmatpush3.bf16.msra.mxu0 %v1723_v1  ;;  %1589 = vmatpush3.bf16.msra.mxu1 %v1723_v1 }
  0x2c   : > { %1558 = vmatprep.subr.bf16.mxu0 %v1730_v2  ;;  %1590 = vmatprep.subr.bf16.mxu1 %v1730_v2 }
  0x2e   : > { %1511 = vmatmul.mubr.bf16.gmra.mrb[4].mxu0 %v1640_v14  ;;  %1543 = vmatmul.mubr.bf16.gmra.mrb[4].mxu1 %v1641_v15 }
  0x2f   : > { %1559 = vmatpush3.bf16.msra.mxu0 %v1730_v2  ;;  %1591 = vmatpush3.bf16.msra.mxu1 %v1730_v2 }
  0x30   : > { %1560 = vmatprep.subr.bf16.mxu0 %v1751_v3  ;;  %1592 = vmatprep.subr.bf16.mxu1 %v1751_v3 }
  0x31   : > { %1514 = vmatprep.mubr.bf16.mxu0 %v1642_v16  ;;  %1546 = vmatprep.mubr.bf16.mxu1 %v1643_v17 }
  0x33   : > { %1561 = vmatpush3.bf16.msra.mxu0 %v1751_v3  ;;  %1593 = vmatpush3.bf16.msra.mxu1 %v1751_v3 }
  0x34   : > { %1562 = vmatprep.subr.bf16.mxu0 %v1764_v6  ;;  %1594 = vmatprep.subr.bf16.mxu1 %v1764_v6 }
  0x36   : > { %1515 = vmatmul.mubr.bf16.gmra.mrb[8].mxu0 %v1644_v18  ;;  %1547 = vmatmul.mubr.bf16.gmra.mrb[8].mxu1 %v1645_v19 }
  0x37   : > { %1563 = vmatpush3.bf16.msra.mxu0 %v1764_v6  ;;  %1595 = vmatpush3.bf16.msra.mxu1 %v1764_v6 }
  0x38   : > { %1564 = vmatprep.subr.bf16.mxu0 %v1773_v7  ;;  %1596 = vmatprep.subr.bf16.mxu1 %v1773_v7 }
  0x39   : > { %1518 = vmatprep.mubr.bf16.mxu0 %v1646_v20  ;;  %1550 = vmatprep.mubr.bf16.mxu1 %v1647_v21 }
  0x3b   : > { %1565 = vmatpush3.bf16.msra.mxu0 %v1773_v7  ;;  %1597 = vmatpush3.bf16.msra.mxu1 %v1773_v7 }
  0x3c   : > { %1566 = vmatprep.subr.bf16.mxu0 %v1782_v8  ;;  %1598 = vmatprep.subr.bf16.mxu1 %v1782_v8 }
  0x3e   : > { %1519 = vmatmul.mubr.bf16.gmra.mrb[12].mxu0 %v1648_v22  ;;  %1551 = vmatmul.mubr.bf16.gmra.mrb[12].mxu1 %v1649_v23 }
  0x3f   : > { %1567 = vmatpush3.bf16.msra.mxu0 %v1782_v8  ;;  %1599 = vmatpush3.bf16.msra.mxu1 %v1782_v8 }
  0x40   : > { %1568 = vmatprep.subr.bf16.mxu0 %v1797_v9  ;;  %1600 = vmatprep.subr.bf16.mxu1 %v1797_v9 }
  0x41   : > { %1570 = vmatprep.mubr.bf16.mxu0 %v1650_v24  ;;  %1602 = vmatprep.mubr.bf16.mxu1 %v1651_v25 }
  0x43   : > { %1569 = vmatpush3.bf16.msra.mxu0 %v1797_v9  ;;  %1601 = vmatpush3.bf16.msra.mxu1 %v1797_v9 }
  0x46   : > { %1571 = vmatmul.mubr.bf16.vlgmr.msra.gmra.mrb[16].mxu0 %v1652_v26  ;;  %1603 = vmatmul.mubr.bf16.vlgmr.msra.gmra.mrb[16].mxu1 %v1653_v27 }
  0x47   : > { %1574 = vmatprep.mubr.bf16.mxu0 %v1654_v28  ;;  %1606 = vmatprep.mubr.bf16.mxu1 %v1655_v29  ;;  %v1944_v29 = vld [vmem:[%s2020_s5] ss:$0 sm:$0xff] }
  0x4e   : > { %1575 = vmatmul.mubr.bf16.gmra.mrb[20].mxu0 %v1656_v30  ;;  %1607 = vmatmul.mubr.bf16.gmra.mrb[20].mxu1 %v1657_v31 }
  0x4f   : > { %1578 = vmatprep.mubr.bf16.mxu0 %v1658_v32  ;;  %1610 = vmatprep.mubr.bf16.mxu1 %v1659_v33 }
  0x56   : > { %1579 = vmatmul.mubr.bf16.gmra.mrb[24].mxu0 %v1660_v34  ;;  %1611 = vmatmul.mubr.bf16.gmra.mrb[24].mxu1 %v1661_v35 }
  0x57   : > { %1582 = vmatprep.mubr.bf16.mxu0 %v1662_v36  ;;  %1614 = vmatprep.mubr.bf16.mxu1 %v1663_v37 }
  0x5e   : > { %1583 = vmatmul.mubr.bf16.gmra.mrb[28].mxu0 %v1664_v38  ;;  %1615 = vmatmul.mubr.bf16.gmra.mrb[28].mxu1 %v1665_v39 }
  0xf9   : > { %v1508_v40 = vpop.f32.mrb[0].mxu0  ;;  %v1540_v41 = vpop.f32.mrb[0].mxu1 }
  0xfa   : > { %v710_v42 = vmax.f32 %v1508_v40, %v1540_v41  ;;  %v484_v43 = vpop.f32.mrb[1].mxu0  ;;  %v645_v44 = vpop.f32.mrb[1].mxu1 }
  0xfb   : > { %v708_v45 = vmax.f32 %v484_v43, %v645_v44  ;;  %v1509_v46 = vpop.f32.mrb[2].mxu0  ;;  %v1541_v47 = vpop.f32.mrb[2].mxu1 }
  0xfc   : > { %v711_v48 = vmax.f32 %v1509_v46, %v1541_v47  ;;  %v487_v49 = vpop.f32.mrb[3].mxu0  ;;  %v648_v50 = vpop.f32.mrb[3].mxu1 }
  0xfd   : > { %v709_v51 = vmax.f32 %v487_v49, %v648_v50 }
 0x101   : > { %v1869_v52 = vpop.f32.mrb[4].mxu0  ;;  %v1871_v53 = vpop.f32.mrb[4].mxu1 }
 0x102   : > { %v714_v54 = vmax.f32 %v1869_v52, %v1871_v53  ;;  %v1875_v55 = vpop.f32.mrb[5].mxu0  ;;  %v1877_v56 = vpop.f32.mrb[5].mxu1 }
 0x103   : > { %v712_v57 = vmax.f32 %v1875_v55, %v1877_v56  ;;  %v1881_v58 = vpop.f32.mrb[6].mxu0  ;;  %v1883_v59 = vpop.f32.mrb[6].mxu1 }
 0x104   : > { %v715_v60 = vmax.f32 %v1881_v58, %v1883_v59  ;;  %v1887_v61 = vpop.f32.mrb[7].mxu0  ;;  %v1889_v62 = vpop.f32.mrb[7].mxu1 }
 0x105   : > { %v713_v63 = vmax.f32 %v1887_v61, %v1889_v62 }
 0x109   : > { %v1893_v0 = vpop.f32.mrb[8].mxu0  ;;  %v1895_v1 = vpop.f32.mrb[8].mxu1 }
 0x10a   : > { %v718_v2 = vmax.f32 %v1893_v0, %v1895_v1  ;;  %v1899_v3 = vpop.f32.mrb[9].mxu0  ;;  %v1901_v4 = vpop.f32.mrb[9].mxu1 }
 0x10b   : > { %v716_v5 = vmax.f32 %v1899_v3, %v1901_v4  ;;  %v1905_v6 = vpop.f32.mrb[10].mxu0  ;;  %v1907_v7 = vpop.f32.mrb[10].mxu1 }
 0x10c   : > { %v719_v8 = vmax.f32 %v1905_v6, %v1907_v7  ;;  %v1911_v9 = vpop.f32.mrb[11].mxu0  ;;  %v1913_v10 = vpop.f32.mrb[11].mxu1 }
 0x10d   : > { %v717_v11 = vmax.f32 %v1911_v9, %v1913_v10 }
 0x111   : > { %v1917_v12 = vpop.f32.mrb[12].mxu0  ;;  %v1919_v13 = vpop.f32.mrb[12].mxu1 }
 0x112   : > { %v722_v14 = vmax.f32 %v1917_v12, %v1919_v13  ;;  %v1923_v15 = vpop.f32.mrb[13].mxu0  ;;  %v1925_v16 = vpop.f32.mrb[13].mxu1 }
 0x113   : > { %v720_v17 = vmax.f32 %v1923_v15, %v1925_v16  ;;  %v1929_v18 = vpop.f32.mrb[14].mxu0  ;;  %v1931_v19 = vpop.f32.mrb[14].mxu1 }
 0x114   : > { %v723_v20 = vmax.f32 %v1929_v18, %v1931_v19  ;;  %v1935_v21 = vpop.f32.mrb[15].mxu0  ;;  %v1937_v22 = vpop.f32.mrb[15].mxu1 }
 0x115   : > { %v721_v23 = vmax.f32 %v1935_v21, %v1937_v22 }
 0x119   : > { %v1572_v24 = vpop.f32.mrb[16].mxu0  ;;  %v1604_v25 = vpop.f32.mrb[16].mxu1 }
 0x11a   : > { %v1048_v26 = vmax.f32 %v1572_v24, %v1604_v25  ;;  %v822_v27 = vpop.f32.mrb[17].mxu0  ;;  %v983_v28 = vpop.f32.mrb[17].mxu1 }
 0x11b   : > { %v1046_v30 = vmax.f32 %v822_v27, %v983_v28  ;;  %v1573_v31 = vpop.f32.mrb[18].mxu0  ;;  %v1605_v32 = vpop.f32.mrb[18].mxu1 }
 0x11c   : > { %v1064_v33 = vmax.f32 %v710_v42, %v1048_v26  ;;  %v1049_v34 = vmax.f32 %v1573_v31, %v1605_v32  ;;  %v825_v35 = vpop.f32.mrb[19].mxu0  ;;  %v986_v36 = vpop.f32.mrb[19].mxu1 }
 0x11d   : > { %v1062_v37 = vmax.f32 %v708_v45, %v1046_v30  ;;  %v1047_v38 = vmax.f32 %v825_v35, %v986_v36 }
 0x11e   : > { %v1087_v39 = vadd.f32 %v1944_v29, %v1064_v33  ;;  %v1065_v40 = vmax.f32 %v711_v48, %v1049_v34 }
 0x11f   : > { %v1085_v41 = vadd.f32 %v1944_v29, %v1062_v37  ;;  %v1063_v43 = vmax.f32 %v709_v51, %v1047_v38 }
 0x120   : > { %v1088_v44 = vadd.f32 %v1944_v29, %v1065_v40  ;;  %v1103_v50 = vmax.f32 %v1087_v39, 0.0 }
 0x121   : > { %v1086_v46 = vadd.f32 %v1944_v29, %v1063_v43  ;;  %v1576_v47 = vpop.f32.mrb[20].mxu0  ;;  %v1608_v49 = vpop.f32.mrb[20].mxu1  ;;  %v1101_v45 = vmax.f32 %v1085_v41, 0.0 }
 0x122   : > { %v1104_v42 = vmax.f32 %v1088_v44, 0.0  ;;  %v1052_v24 = vmax.f32 %v1576_v47, %v1608_v49  ;;  %v838_v25 = vpop.f32.mrb[21].mxu0  ;;  %v999_v26 = vpop.f32.mrb[21].mxu1 }
 0x123   : > { %v1102_v48 = vmax.f32 %v1086_v46, 0.0  ;;  %v1050_v51 = vmax.f32 %v838_v25, %v999_v26  ;;  %v1577_v27 = vpop.f32.mrb[22].mxu0  ;;  %v1609_v28 = vpop.f32.mrb[22].mxu1 }
 0x124   : > { %v1387_v30 = vpack.c.bf16 %v1104_v42, %v1103_v50  ;;  %v1068_v31 = vmax.f32 %v714_v54, %v1052_v24  ;;  %v1053_v32 = vmax.f32 %v1577_v27, %v1609_v28  ;;  %v841_v33 = vpop.f32.mrb[23].mxu0  ;;  %v1002_v34 = vpop.f32.mrb[23].mxu1 }
 0x125   : > { %v1382_v35 = vpack.c.bf16 %v1102_v48, %v1101_v45  ;;  %v1066_v36 = vmax.f32 %v712_v57, %v1050_v51  ;;  %v1051_v37 = vmax.f32 %v841_v33, %v1002_v34 }
 0x126   : > { %1419 = vst [vmem:[%s1954_s11 + $0x8] sm:$0xff] %v1387_v30   ;;  %v1091_v38 = vadd.f32 %v1944_v29, %v1068_v31  ;;  %v1069_v39 = vmax.f32 %v715_v60, %v1053_v32 }
 0x127   : > { %1383 = vst [vmem:[%s1954_s11] sm:$0xff] %v1382_v35   ;;  %v1089_v52 = vadd.f32 %v1944_v29, %v1066_v36  ;;  %v1067_v53 = vmax.f32 %v713_v63, %v1051_v37 }
 0x128   : > { %v1092_v54 = vadd.f32 %v1944_v29, %v1069_v39  ;;  %v1107_v40 = vmax.f32 %v1091_v38, 0.0 }
 0x129   : > { %v1090_v55 = vadd.f32 %v1944_v29, %v1067_v53  ;;  %v1580_v56 = vpop.f32.mrb[24].mxu0  ;;  %v1612_v57 = vpop.f32.mrb[24].mxu1  ;;  %v1105_v59 = vmax.f32 %v1089_v52, 0.0 }
 0x12a   : > { %v1108_v41 = vmax.f32 %v1092_v54, 0.0  ;;  %v1056_v43 = vmax.f32 %v1580_v56, %v1612_v57  ;;  %v854_v44 = vpop.f32.mrb[25].mxu0  ;;  %v1015_v58 = vpop.f32.mrb[25].mxu1 }
 0x12b   : > { %v1106_v60 = vmax.f32 %v1090_v55, 0.0  ;;  %v1054_v46 = vmax.f32 %v854_v44, %v1015_v58  ;;  %v1581_v47 = vpop.f32.mrb[26].mxu0  ;;  %v1613_v49 = vpop.f32.mrb[26].mxu1 }
 0x12c   : > { %v1397_v61 = vpack.c.bf16 %v1108_v41, %v1107_v40  ;;  %v1072_v62 = vmax.f32 %v718_v2, %v1056_v43  ;;  %v1057_v63 = vmax.f32 %v1581_v47, %v1613_v49  ;;  %v857_v50 = vpop.f32.mrb[27].mxu0  ;;  %v1018_v42 = vpop.f32.mrb[27].mxu1 }
 0x12d   : > { %v1392_v24 = vpack.c.bf16 %v1106_v60, %v1105_v59  ;;  %v1070_v25 = vmax.f32 %v716_v5, %v1054_v46  ;;  %v1055_v26 = vmax.f32 %v857_v50, %v1018_v42 }
 0x12e   : > { %1421 = vst [vmem:[%s1954_s11 + $0x18] sm:$0xff] %v1397_v61   ;;  %v1095_v45 = vadd.f32 %v1944_v29, %v1072_v62  ;;  %v1073_v48 = vmax.f32 %v719_v8, %v1057_v63 }
 0x12f   : > { %1420 = vst [vmem:[%s1954_s11 + $0x10] sm:$0xff] %v1392_v24   ;;  %v1093_v0 = vadd.f32 %v1944_v29, %v1070_v25  ;;  %v1071_v1 = vmax.f32 %v717_v11, %v1055_v26 }
 0x130   : > { %v1096_v2 = vadd.f32 %v1944_v29, %v1073_v48  ;;  %v1111_v51 = vmax.f32 %v1095_v45, 0.0 }
 0x131   : > { %v1094_v3 = vadd.f32 %v1944_v29, %v1071_v1  ;;  %v1584_v4 = vpop.f32.mrb[28].mxu0  ;;  %v1616_v5 = vpop.f32.mrb[28].mxu1  ;;  %v1109_v7 = vmax.f32 %v1093_v0, 0.0 }
 0x132   : > { %v1112_v27 = vmax.f32 %v1096_v2, 0.0  ;;  %v1060_v28 = vmax.f32 %v1584_v4, %v1616_v5  ;;  %v870_v30 = vpop.f32.mrb[29].mxu0  ;;  %v1031_v6 = vpop.f32.mrb[29].mxu1 }
 0x133   : > { %v1110_v8 = vmax.f32 %v1094_v3, 0.0  ;;  %v1058_v31 = vmax.f32 %v870_v30, %v1031_v6  ;;  %v1585_v32 = vpop.f32.mrb[30].mxu0  ;;  %v1617_v33 = vpop.f32.mrb[30].mxu1 }
 0x134   : > { %v1407_v9 = vpack.c.bf16 %v1112_v27, %v1111_v51  ;;  %v1076_v10 = vmax.f32 %v722_v14, %v1060_v28  ;;  %v1061_v11 = vmax.f32 %v1585_v32, %v1617_v33  ;;  %v873_v34 = vpop.f32.mrb[31].mxu0  ;;  %v1034_v35 = vpop.f32.mrb[31].mxu1 }
 0x135   : > { %v1402_v36 = vpack.c.bf16 %v1110_v8, %v1109_v7  ;;  %v1074_v37 = vmax.f32 %v720_v17, %v1058_v31  ;;  %v1059_v38 = vmax.f32 %v873_v34, %v1034_v35 }
 0x136   : > { %1423 = vst [vmem:[%s1954_s11 + $0x28] sm:$0xff] %v1407_v9   ;;  %v1099_v39 = vadd.f32 %v1944_v29, %v1076_v10  ;;  %v1077_v52 = vmax.f32 %v723_v20, %v1061_v11 }
 0x137   : > { %1422 = vst [vmem:[%s1954_s11 + $0x20] sm:$0xff] %v1402_v36   ;;  %v1097_v12 = vadd.f32 %v1944_v29, %v1074_v37  ;;  %v1075_v13 = vmax.f32 %v721_v23, %v1059_v38 }
 0x138   : > { %v1100_v14 = vadd.f32 %v1944_v29, %v1077_v52  ;;  %v1115_v16 = vmax.f32 %v1099_v39, 0.0 }
 0x139   : > { %v1098_v15 = vadd.f32 %v1944_v29, %v1075_v13  ;;  %v1113_v53 = vmax.f32 %v1097_v12, 0.0 }
 0x13a   : > { %v1116_v17 = vmax.f32 %v1100_v14, 0.0 }
 0x13b   : > { %v1114_v54 = vmax.f32 %v1098_v15, 0.0 }
 0x13c   : > { %v1417_v55 = vpack.c.bf16 %v1116_v17, %v1115_v16 }
 0x13d   : > { %v1412_v56 = vpack.c.bf16 %v1114_v54, %v1113_v53 }
 0x13e   : > { %1425 = vst [vmem:[%s1954_s11 + $0x38] sm:$0xff] %v1417_v55  }
 0x13f   : > { %1424 = vst [vmem:[%s1954_s11 + $0x30] sm:$0xff] %v1412_v56  }
 0x140 PF: > { %s16_s21 = sadd.s32 1, %s1672_s21  }
 0x141   : > { %p13_p4 = scmp.ge.s32.totalorder %s16_s21, 5  }
 0x143   :  { %15 = sbr.rel (!%p13_p4) target bundleno = 1 (0x1), region = 83 }

// kernel: lenet_forward.4
= control target key start
LH: loop header
LB: loop body
LE: loop exit
PB: predicated region body
PF: predicated region fallthrough
CT: control target
= control target key end

     0   :  { %s887_s4 = inlined_call_operand.vmem [shape: bf16[256,128], index: 4, kind: input, shape index: {}]   ;;  %s888_s0 = inlined_call_operand.vmem [shape: bf16[32,256], index: 0, kind: input, shape index: {}]   ;;  %s889_s1 = inlined_call_operand.vmem [shape: bf16[32,256], index: 1, kind: input, shape index: {}]   ;;  %s890_s2 = inlined_call_operand.vmem [shape: bf16[32,256], index: 2, kind: input, shape index: {}]   ;;  %s891_s3 = inlined_call_operand.vmem [shape: bf16[32,256], index: 3, kind: input, shape index: {}]   ;;  %s892_s5 = inlined_call_operand.vmem [shape: f32[1,128], index: 5, kind: input, shape index: {}]   ;;  %s893_s6 = inlined_call_operand.vmem [shape: bf16[32,128], index: 6, kind: output, shape index: {}]  }
   0x1   :  { %v659_v0 = vld [vmem:[%s887_s4 + $0x40] sm:$0xff]   ;;  %v661_v2 = vld [vmem:[%s887_s4 + $0x48] sm:$0xff]   ;;  %v755_v4 = vld [vmem:[%s887_s4 + $0x50] sm:$0xff]  }
   0x2   :  { %v740_v1 = vld [vmem:[%s887_s4] sm:$0xff]   ;;  %547 = vmatprep.subr.bf16.mxu0 %v659_v0  ;;  %575 = vmatprep.subr.bf16.mxu1 %v659_v0  ;;  %v750_v3 = vld [vmem:[%s887_s4 + $0x8] sm:$0xff]   ;;  %v762_v5 = vld [vmem:[%s887_s4 + $0x10] sm:$0xff]  }
   0x3   :  { %548 = vmatpush3.bf16.msra.mxu0 %v740_v1  ;;  %576 = vmatpush3.bf16.msra.mxu1 %v740_v1  ;;  %v769_v6 = vld [vmem:[%s887_s4 + $0x58] sm:$0xff]   ;;  %v783_v8 = vld [vmem:[%s887_s4 + $0x60] sm:$0xff]   ;;  %v669_v10 = vld [vmem:[%s887_s4 + $0x68] sm:$0xff]  }
   0x4   :  { %549 = vmatprep.subr.bf16.mxu0 %v661_v2  ;;  %577 = vmatprep.subr.bf16.mxu1 %v661_v2  ;;  %v776_v7 = vld [vmem:[%s887_s4 + $0x18] sm:$0xff]   ;;  %v790_v9 = vld [vmem:[%s887_s4 + $0x20] sm:$0xff]   ;;  %v670_v13 = vld [vmem:[%s887_s4 + $0x28] sm:$0xff]  }
   0x5   :  { %v677_v11 = vld [vmem:[%s888_s0 + $0x4] ss:$8 sps:$4 sm:$0xff]   ;;  %v671_v14 = vld [vmem:[%s887_s4 + $0x70] sm:$0xff]   ;;  %v673_v16 = vld [vmem:[%s887_s4 + $0x78] sm:$0xff]  }
   0x6   :  { %v680_v12 = vld [vmem:[%s889_s1 + $0x4] ss:$8 sps:$4 sm:$0xff]   ;;  %208 = vmatprep.mubr.bf16.mxu0 %v677_v11  ;;  %v672_v15 = vld [vmem:[%s887_s4 + $0x30] sm:$0xff]   ;;  %v674_v17 = vld [vmem:[%s887_s4 + $0x38] sm:$0xff]  }
   0x7   :  { %550 = vmatpush3.bf16.msra.mxu0 %v750_v3  ;;  %578 = vmatpush3.bf16.msra.mxu1 %v750_v3  ;;  %v675_v18 = vld [vmem:[%s888_s0] ss:$8 sps:$4 sm:$0xff]   ;;  %v681_v20 = vld [vmem:[%s888_s0 + $0x14] ss:$8 sps:$4 sm:$0xff]   ;;  %v685_v22 = vld [vmem:[%s888_s0 + $0x10] ss:$8 sps:$4 sm:$0xff]  }
   0x8   :  { %551 = vmatprep.subr.bf16.mxu0 %v755_v4  ;;  %579 = vmatprep.subr.bf16.mxu1 %v755_v4  ;;  %v678_v19 = vld [vmem:[%s889_s1] ss:$8 sps:$4 sm:$0xff]   ;;  %v683_v21 = vld [vmem:[%s889_s1 + $0x14] ss:$8 sps:$4 sm:$0xff]   ;;  %v686_v23 = vld [vmem:[%s889_s1 + $0x10] ss:$8 sps:$4 sm:$0xff]  }
   0x9   :  { %281 = vmatprep.mubr.bf16.mxu1 %v680_v12  ;;  %v689_v24 = vld [vmem:[%s890_s2 + $0x4] ss:$8 sps:$4 sm:$0xff]   ;;  %v687_v26 = vld [vmem:[%s890_s2] ss:$8 sps:$4 sm:$0xff]   ;;  %v693_v28 = vld [vmem:[%s890_s2 + $0x14] ss:$8 sps:$4 sm:$0xff]  }
   0xa   :  { %v692_v25 = vld [vmem:[%s891_s3 + $0x4] ss:$8 sps:$4 sm:$0xff]   ;;  %v690_v27 = vld [vmem:[%s891_s3] ss:$8 sps:$4 sm:$0xff]   ;;  %v695_v29 = vld [vmem:[%s891_s3 + $0x14] ss:$8 sps:$4 sm:$0xff]  }
   0xb   :  { %552 = vmatpush3.bf16.msra.mxu0 %v762_v5  ;;  %580 = vmatpush3.bf16.msra.mxu1 %v762_v5  ;;  %v697_v30 = vld [vmem:[%s890_s2 + $0x10] ss:$8 sps:$4 sm:$0xff]  }
   0xc   :  { %553 = vmatprep.subr.bf16.mxu0 %v769_v6  ;;  %581 = vmatprep.subr.bf16.mxu1 %v769_v6  ;;  %v698_v31 = vld [vmem:[%s891_s3 + $0x10] ss:$8 sps:$4 sm:$0xff]  }
   0xf   :  { %554 = vmatpush3.bf16.msra.mxu0 %v776_v7  ;;  %582 = vmatpush3.bf16.msra.mxu1 %v776_v7 }
  0x10   :  { %555 = vmatprep.subr.bf16.mxu0 %v783_v8  ;;  %583 = vmatprep.subr.bf16.mxu1 %v783_v8 }
  0x13   :  { %556 = vmatpush3.bf16.msra.mxu0 %v790_v9  ;;  %584 = vmatpush3.bf16.msra.mxu1 %v790_v9 }
  0x14   :  { %557 = vmatprep.subr.bf16.mxu0 %v669_v10  ;;  %585 = vmatprep.subr.bf16.mxu1 %v669_v10 }
  0x17   :  { %558 = vmatpush3.bf16.msra.mxu0 %v670_v13  ;;  %586 = vmatpush3.bf16.msra.mxu1 %v670_v13 }
  0x18   :  { %559 = vmatprep.subr.bf16.mxu0 %v671_v14  ;;  %587 = vmatprep.subr.bf16.mxu1 %v671_v14 }
  0x1b   :  { %560 = vmatpush3.bf16.msra.mxu0 %v672_v15  ;;  %588 = vmatpush3.bf16.msra.mxu1 %v672_v15 }
  0x1c   :  { %561 = vmatprep.subr.bf16.mxu0 %v673_v16  ;;  %589 = vmatprep.subr.bf16.mxu1 %v673_v16 }
  0x1f   :  { %562 = vmatpush3.bf16.msra.mxu0 %v674_v17  ;;  %590 = vmatpush3.bf16.msra.mxu1 %v674_v17 }
  0x20   :  { %603 = vmatprep.subr.bf16.mxu0 %v659_v0  ;;  %631 = vmatprep.subr.bf16.mxu1 %v659_v0 }
  0x22   :  { %209 = vmatmul.mubr.bf16.vlgmr.msra.gmra.mrb[0].mxu0 %v675_v18  ;;  %282 = vmatmul.mubr.bf16.vlgmr.msra.gmra.mrb[0].mxu1 %v678_v19 }
  0x23   :  { %604 = vmatpush3.bf16.msra.mxu0 %v740_v1  ;;  %632 = vmatpush3.bf16.msra.mxu1 %v740_v1 }
  0x24   :  { %605 = vmatprep.subr.bf16.mxu0 %v661_v2  ;;  %633 = vmatprep.subr.bf16.mxu1 %v661_v2 }
  0x25   :  { %216 = vmatprep.mubr.bf16.mxu0 %v681_v20  ;;  %289 = vmatprep.mubr.bf16.mxu1 %v683_v21 }
  0x27   :  { %606 = vmatpush3.bf16.msra.mxu0 %v750_v3  ;;  %634 = vmatpush3.bf16.msra.mxu1 %v750_v3 }
  0x28   :  { %607 = vmatprep.subr.bf16.mxu0 %v755_v4  ;;  %635 = vmatprep.subr.bf16.mxu1 %v755_v4 }
  0x2a   :  { %217 = vmatmul.mubr.bf16.gmra.mrb[4].mxu0 %v685_v22  ;;  %290 = vmatmul.mubr.bf16.gmra.mrb[4].mxu1 %v686_v23 }
  0x2b   :  { %608 = vmatpush3.bf16.msra.mxu0 %v762_v5  ;;  %636 = vmatpush3.bf16.msra.mxu1 %v762_v5 }
  0x2c   :  { %609 = vmatprep.subr.bf16.mxu0 %v769_v6  ;;  %637 = vmatprep.subr.bf16.mxu1 %v769_v6 }
  0x2d   :  { %358 = vmatprep.mubr.bf16.mxu0 %v689_v24  ;;  %431 = vmatprep.mubr.bf16.mxu1 %v692_v25 }
  0x2f   :  { %610 = vmatpush3.bf16.msra.mxu0 %v776_v7  ;;  %638 = vmatpush3.bf16.msra.mxu1 %v776_v7 }
  0x30   :  { %611 = vmatprep.subr.bf16.mxu0 %v783_v8  ;;  %639 = vmatprep.subr.bf16.mxu1 %v783_v8 }
  0x33   :  { %612 = vmatpush3.bf16.msra.mxu0 %v790_v9  ;;  %640 = vmatpush3.bf16.msra.mxu1 %v790_v9  ;;  %v527_v9 = vld [vmem:[%s892_s5] ss:$0 sm:$0xff] }
  0x34   :  { %613 = vmatprep.subr.bf16.mxu0 %v669_v10  ;;  %641 = vmatprep.subr.bf16.mxu1 %v669_v10 }
  0x37   :  { %614 = vmatpush3.bf16.msra.mxu0 %v670_v13  ;;  %642 = vmatpush3.bf16.msra.mxu1 %v670_v13 }
  0x38   :  { %615 = vmatprep.subr.bf16.mxu0 %v671_v14  ;;  %643 = vmatprep.subr.bf16.mxu1 %v671_v14 }
  0x3b   :  { %616 = vmatpush3.bf16.msra.mxu0 %v672_v15  ;;  %644 = vmatpush3.bf16.msra.mxu1 %v672_v15 }
  0x3c   :  { %617 = vmatprep.subr.bf16.mxu0 %v673_v16  ;;  %645 = vmatprep.subr.bf16.mxu1 %v673_v16 }
  0x3f   :  { %618 = vmatpush3.bf16.msra.mxu0 %v674_v17  ;;  %646 = vmatpush3.bf16.msra.mxu1 %v674_v17 }
  0x42   :  { %359 = vmatmul.mubr.bf16.vlgmr.msra.gmra.mrb[8].mxu0 %v687_v26  ;;  %432 = vmatmul.mubr.bf16.vlgmr.msra.gmra.mrb[8].mxu1 %v690_v27 }
  0x43   :  { %366 = vmatprep.mubr.bf16.mxu0 %v693_v28  ;;  %439 = vmatprep.mubr.bf16.mxu1 %v695_v29 }
  0x4a   :  { %367 = vmatmul.mubr.bf16.gmra.mrb[12].mxu0 %v697_v30  ;;  %440 = vmatmul.mubr.bf16.gmra.mrb[12].mxu1 %v698_v31 }
  0xf5   :  { %v563_v32 = vpop.f32.mrb[0].mxu0  ;;  %v591_v33 = vpop.f32.mrb[0].mxu1 }
  0xf6   :  { %v564_v34 = vpop.f32.mrb[1].mxu0  ;;  %v592_v35 = vpop.f32.mrb[1].mxu1 }
  0xf7   :  { %v565_v36 = vadd.f32 %v564_v34, %v563_v32  ;;  %v593_v37 = vadd.f32 %v592_v35, %v591_v33  ;;  %v566_v38 = vpop.f32.mrb[2].mxu0  ;;  %v594_v39 = vpop.f32.mrb[2].mxu1 }
  0xf8   :  { %v567_v40 = vpop.f32.mrb[3].mxu0  ;;  %v595_v41 = vpop.f32.mrb[3].mxu1 }
  0xf9   :  { %v298_v42 = vmax.f32 %v565_v36, %v593_v37  ;;  %v568_v43 = vadd.f32 %v567_v40, %v566_v38  ;;  %v596_v44 = vadd.f32 %v595_v41, %v594_v39 }
  0xfb   :  { %v299_v45 = vmax.f32 %v568_v43, %v596_v44 }
  0xfd   :  { %v569_v46 = vpop.f32.mrb[4].mxu0  ;;  %v597_v47 = vpop.f32.mrb[4].mxu1 }
  0xfe   :  { %v570_v48 = vpop.f32.mrb[5].mxu0  ;;  %v598_v49 = vpop.f32.mrb[5].mxu1 }
  0xff   :  { %v571_v50 = vadd.f32 %v570_v48, %v569_v46  ;;  %v599_v51 = vadd.f32 %v598_v49, %v597_v47  ;;  %v572_v52 = vpop.f32.mrb[6].mxu0  ;;  %v600_v53 = vpop.f32.mrb[6].mxu1 }
 0x100   :  { %v573_v54 = vpop.f32.mrb[7].mxu0  ;;  %v601_v55 = vpop.f32.mrb[7].mxu1 }
 0x101   :  { %v300_v56 = vmax.f32 %v571_v50, %v599_v51  ;;  %v574_v57 = vadd.f32 %v573_v54, %v572_v52  ;;  %v602_v58 = vadd.f32 %v601_v55, %v600_v53 }
 0x103   :  { %v301_v59 = vmax.f32 %v574_v57, %v602_v58 }
 0x115   :  { %v619_v60 = vpop.f32.mrb[8].mxu0  ;;  %v647_v61 = vpop.f32.mrb[8].mxu1 }
 0x116   :  { %v620_v62 = vpop.f32.mrb[9].mxu0  ;;  %v648_v63 = vpop.f32.mrb[9].mxu1 }
 0x117   :  { %v621_v0 = vadd.f32 %v620_v62, %v619_v60  ;;  %v649_v1 = vadd.f32 %v648_v63, %v647_v61  ;;  %v622_v2 = vpop.f32.mrb[10].mxu0  ;;  %v650_v3 = vpop.f32.mrb[10].mxu1 }
 0x118   :  { %v623_v4 = vpop.f32.mrb[11].mxu0  ;;  %v651_v5 = vpop.f32.mrb[11].mxu1 }
 0x119   :  { %v448_v6 = vmax.f32 %v621_v0, %v649_v1  ;;  %v624_v7 = vadd.f32 %v623_v4, %v622_v2  ;;  %v652_v8 = vadd.f32 %v651_v5, %v650_v3 }
 0x11b   :  { %v452_v10 = vmax.f32 %v298_v42, %v448_v6  ;;  %v449_v11 = vmax.f32 %v624_v7, %v652_v8 }
 0x11d   :  { %v463_v12 = vadd.f32 %v527_v9, %v452_v10  ;;  %v453_v13 = vmax.f32 %v299_v45, %v449_v11  ;;  %v625_v14 = vpop.f32.mrb[12].mxu0  ;;  %v653_v15 = vpop.f32.mrb[12].mxu1 }
 0x11e   :  { %v626_v16 = vpop.f32.mrb[13].mxu0  ;;  %v654_v17 = vpop.f32.mrb[13].mxu1 }
 0x11f   :  { %v464_v18 = vadd.f32 %v527_v9, %v453_v13  ;;  %v627_v19 = vadd.f32 %v626_v16, %v625_v14  ;;  %v655_v20 = vadd.f32 %v654_v17, %v653_v15  ;;  %v628_v21 = vpop.f32.mrb[14].mxu0  ;;  %v656_v22 = vpop.f32.mrb[14].mxu1  ;;  %v467_v23 = vmax.f32 %v463_v12, 0.0 }
 0x120   :  { %v629_v24 = vpop.f32.mrb[15].mxu0  ;;  %v657_v25 = vpop.f32.mrb[15].mxu1 }
 0x121   :  { %v468_v26 = vmax.f32 %v464_v18, 0.0  ;;  %v450_v27 = vmax.f32 %v627_v19, %v655_v20  ;;  %v630_v28 = vadd.f32 %v629_v24, %v628_v21  ;;  %v658_v29 = vadd.f32 %v657_v25, %v656_v22 }
 0x123   :  { %v539_v30 = vpack.c.bf16 %v468_v26, %v467_v23  ;;  %v454_v31 = vmax.f32 %v300_v56, %v450_v27  ;;  %v451_v32 = vmax.f32 %v630_v28, %v658_v29 }
 0x125   :  { %540 = vst [vmem:[%s893_s6] sm:$0xff] %v539_v30   ;;  %v465_v33 = vadd.f32 %v527_v9, %v454_v31  ;;  %v455_v34 = vmax.f32 %v301_v59, %v451_v32 }
 0x127   :  { %v466_v35 = vadd.f32 %v527_v9, %v455_v34  ;;  %v469_v36 = vmax.f32 %v465_v33, 0.0 }
 0x129   :  { %v470_v37 = vmax.f32 %v466_v35, 0.0 }
 0x12b   :  { %v544_v38 = vpack.c.bf16 %v470_v37, %v469_v36 }
 0x12d   :  { %546 = vst [vmem:[%s893_s6 + $0x8] sm:$0xff] %v544_v38  }

// kernel: lenet_forward.5
= control target key start
LH: loop header
LB: loop body
LE: loop exit
PB: predicated region body
PF: predicated region fallthrough
CT: control target
= control target key end

     0   :  { %v607_v1 = vmov 0.0   ;;  %vm608_vm0 = vmmov 0   ;;  %s784_s1 = inlined_call_operand.vmem [shape: bf16[256,128], index: 1, kind: input, shape index: {}]   ;;  %s785_s0 = inlined_call_operand.vmem [shape: bf16[16,256], index: 0, kind: input, shape index: {}]   ;;  %s786_s3 = inlined_call_operand.vmem [shape: bf16[128,128], index: 3, kind: input, shape index: {}]   ;;  %s787_s5 = inlined_call_operand.vmem [shape: bf16[128,128], index: 5, kind: input, shape index: {}]   ;;  %s788_s2 = inlined_call_operand.vmem [shape: f32[1,128], index: 2, kind: input, shape index: {}]   ;;  %s789_s4 = inlined_call_operand.vmem [shape: f32[1,128], index: 4, kind: input, shape index: {}]   ;;  %s790_s6 = inlined_call_operand.vmem [shape: f32[1,128], index: 6, kind: input, shape index: {}]   ;;  %s791_s7 = inlined_call_operand.vmem [shape: f32[16,128], index: 7, kind: output, shape index: {}]  }
   0x1   :  { %v572_v0 = vld [vmem:[%s784_s1 + $0x40] sm:$0xff]   ;;  %530 = vmatprep.subr.bf16.mxu1 %v607_v1  ;;  %v574_v3 = vld [vmem:[%s784_s1 + $0x48] sm:$0xff]   ;;  %v576_v5 = vld [vmem:[%s784_s1 + $0x50] sm:$0xff]   ;;  %546 = vmatprep.mubr.msk.bf16.mxu1 %vm608_vm0, %v607_v1 }
   0x2   :  { %v573_v2 = vld [vmem:[%s784_s1] sm:$0xff]   ;;  %490 = vmatprep.subr.bf16.mxu0 %v572_v0  ;;  %v575_v4 = vld [vmem:[%s784_s1 + $0x8] sm:$0xff]   ;;  %v577_v6 = vld [vmem:[%s784_s1 + $0x10] sm:$0xff]  }
   0x3   :  { %491 = vmatpush3.bf16.msra.mxu0 %v573_v2  ;;  %v578_v7 = vld [vmem:[%s784_s1 + $0x58] sm:$0xff]   ;;  %v580_v9 = vld [vmem:[%s784_s1 + $0x60] sm:$0xff]   ;;  %v582_v11 = vld [vmem:[%s784_s1 + $0x68] sm:$0xff]  }
   0x4   :  { %492 = vmatprep.subr.bf16.mxu0 %v574_v3  ;;  %v579_v8 = vld [vmem:[%s784_s1 + $0x18] sm:$0xff]   ;;  %v581_v10 = vld [vmem:[%s784_s1 + $0x20] sm:$0xff]   ;;  %v583_v12 = vld [vmem:[%s784_s1 + $0x28] sm:$0xff]  }
   0x5   :  { %v590_v13 = vld [vmem:[%s785_s0 + $0x4] ss:$8 sps:$4 sm:$0xff]   ;;  %v584_v15 = vld [vmem:[%s784_s1 + $0x70] sm:$0xff]   ;;  %v586_v18 = vld [vmem:[%s784_s1 + $0x78] sm:$0xff]  }
   0x6   :  { %v591_v14 = vld [vmem:[%s786_s3] sm:$0xff]   ;;  %206 = vmatprep.mubr.bf16.mxu0 %v590_v13  ;;  %v592_v16 = vld [vmem:[%s786_s3 + $0x8] sm:$0xff]   ;;  %v585_v17 = vld [vmem:[%s784_s1 + $0x30] sm:$0xff]  }
   0x7   :  { %493 = vmatpush3.bf16.msra.mxu0 %v575_v4  ;;  %531 = vmatpush3.bf16.msra.mxu1 %v591_v14  ;;  %v593_v19 = vld [vmem:[%s786_s3 + $0x10] sm:$0xff]   ;;  %v587_v20 = vld [vmem:[%s784_s1 + $0x38] sm:$0xff]   ;;  %v588_v22 = vld [vmem:[%s785_s0] ss:$8 sps:$4 sm:$0xff]  }
   0x8   :  { %494 = vmatprep.subr.bf16.mxu0 %v576_v5  ;;  %532 = vmatprep.subr.bf16.mxu1 %v607_v1  ;;  %v594_v21 = vld [vmem:[%s786_s3 + $0x18] sm:$0xff]   ;;  %v595_v23 = vld [vmem:[%s786_s3 + $0x20] sm:$0xff]   ;;  %v596_v24 = vld [vmem:[%s786_s3 + $0x28] sm:$0xff]  }
   0x9   :  { %v597_v25 = vld [vmem:[%s786_s3 + $0x30] sm:$0xff]   ;;  %v598_v26 = vld [vmem:[%s786_s3 + $0x38] sm:$0xff]   ;;  %v599_v27 = vld [vmem:[%s787_s5] sm:$0xff]  }
   0xa   :  { %v600_v28 = vld [vmem:[%s787_s5 + $0x8] sm:$0xff]   ;;  %v601_v29 = vld [vmem:[%s787_s5 + $0x10] sm:$0xff]   ;;  %v602_v30 = vld [vmem:[%s787_s5 + $0x18] sm:$0xff]  }
   0xb   :  { %495 = vmatpush3.bf16.msra.mxu0 %v577_v6  ;;  %533 = vmatpush3.bf16.msra.mxu1 %v592_v16  ;;  %v603_v31 = vld [vmem:[%s787_s5 + $0x20] sm:$0xff]   ;;  %v604_v32 = vld [vmem:[%s787_s5 + $0x28] sm:$0xff]   ;;  %v605_v45 = vld [vmem:[%s787_s5 + $0x30] sm:$0xff]  }
   0xc   :  { %496 = vmatprep.subr.bf16.mxu0 %v578_v7  ;;  %534 = vmatprep.subr.bf16.mxu1 %v607_v1  ;;  %v453_v34 = vld [vmem:[%s788_s2] ss:$0 sm:$0xff]  ;;  %v606_v46 = vld [vmem:[%s787_s5 + $0x38] sm:$0xff]  }
   0xd   :  { %v472_v47 = vld [vmem:[%s789_s4] ss:$0 sm:$0xff] }
   0xe   :  { %v481_v57 = vld [vmem:[%s790_s6] ss:$0 sm:$0xff] }
   0xf   :  { %497 = vmatpush3.bf16.msra.mxu0 %v579_v8  ;;  %535 = vmatpush3.bf16.msra.mxu1 %v593_v19 }
  0x10   :  { %498 = vmatprep.subr.bf16.mxu0 %v580_v9  ;;  %536 = vmatprep.subr.bf16.mxu1 %v607_v1 }
  0x13   :  { %499 = vmatpush3.bf16.msra.mxu0 %v581_v10  ;;  %537 = vmatpush3.bf16.msra.mxu1 %v594_v21 }
  0x14   :  { %500 = vmatprep.subr.bf16.mxu0 %v582_v11  ;;  %538 = vmatprep.subr.bf16.mxu1 %v607_v1 }
  0x17   :  { %501 = vmatpush3.bf16.msra.mxu0 %v583_v12  ;;  %539 = vmatpush3.bf16.msra.mxu1 %v595_v23 }
  0x18   :  { %502 = vmatprep.subr.bf16.mxu0 %v584_v15  ;;  %540 = vmatprep.subr.bf16.mxu1 %v607_v1 }
  0x1b   :  { %503 = vmatpush3.bf16.msra.mxu0 %v585_v17  ;;  %541 = vmatpush3.bf16.msra.mxu1 %v596_v24 }
  0x1c   :  { %504 = vmatprep.subr.bf16.mxu0 %v586_v18  ;;  %542 = vmatprep.subr.bf16.mxu1 %v607_v1 }
  0x1f   :  { %505 = vmatpush3.bf16.msra.mxu0 %v587_v20  ;;  %543 = vmatpush3.bf16.msra.mxu1 %v597_v25 }
  0x20   :  { %550 = vmatprep.subr.bf16.mxu0 %v607_v1  ;;  %544 = vmatprep.subr.bf16.mxu1 %v607_v1 }
  0x22   :  { %207 = vmatmul.mubr.bf16.vlgmr.msra.gmra.mrb[0].mxu0 %v588_v22 }
  0x23   :  { %545 = vmatpush3.bf16.msra.mxu1 %v598_v26  ;;  %566 = vmatprep.mubr.msk.bf16.mxu0 %vm608_vm0, %v607_v1 }
  0x24   :  { %551 = vmatpush3.bf16.msra.mxu0 %v599_v27 }
  0x25   :  { %552 = vmatprep.subr.bf16.mxu0 %v607_v1 }
  0x28   :  { %553 = vmatpush3.bf16.msra.mxu0 %v600_v28 }
  0x29   :  { %554 = vmatprep.subr.bf16.mxu0 %v607_v1 }
  0x2c   :  { %555 = vmatpush3.bf16.msra.mxu0 %v601_v29 }
  0x2d   :  { %556 = vmatprep.subr.bf16.mxu0 %v607_v1 }
  0x30   :  { %557 = vmatpush3.bf16.msra.mxu0 %v602_v30 }
  0x31   :  { %558 = vmatprep.subr.bf16.mxu0 %v607_v1 }
  0x34   :  { %559 = vmatpush3.bf16.msra.mxu0 %v603_v31 }
  0x35   :  { %560 = vmatprep.subr.bf16.mxu0 %v607_v1 }
  0x38   :  { %561 = vmatpush3.bf16.msra.mxu0 %v604_v32 }
  0x39   :  { %562 = vmatprep.subr.bf16.mxu0 %v607_v1 }
  0x3c   :  { %563 = vmatpush3.bf16.msra.mxu0 %v605_v45 }
  0x3d   :  { %564 = vmatprep.subr.bf16.mxu0 %v607_v1 }
  0x40   :  { %565 = vmatpush3.bf16.msra.mxu0 %v606_v46 }
  0xf5   :  { %v506_v33 = vpop.f32.mrb[0].mxu0 }
  0xf6   :  { %v507_v35 = vpop.f32.mrb[1].mxu0 }
  0xf7   :  { %v508_v36 = vadd.f32 %v507_v35, %v506_v33  ;;  %v509_v37 = vpop.f32.mrb[2].mxu0 }
  0xf8   :  { %v510_v38 = vpop.f32.mrb[3].mxu0 }
  0xf9   :  { %v209_v39 = vadd.f32 %v508_v36, %v453_v34  ;;  %v511_v40 = vadd.f32 %v510_v38, %v509_v37 }
  0xfb   :  { %v212_v41 = vadd.f32 %v511_v40, %v453_v34  ;;  %v215_v42 = vmax.f32 %v209_v39, 0.0 }
  0xfd   :  { %v216_v43 = vmax.f32 %v212_v41, 0.0 }
  0xff   :  { %v217_v44 = vpack.c.bf16 %v216_v43, %v215_v42 }
 0x101   :  { %547 = vmatmul.mubr.bf16.vlgmr.msra.gmra.mrb[0].mxu1 %v217_v44 }
 0x1d4   :  { %v323_v48 = vpop.f32.mrb[0].mxu1 }
 0x1d5   :  { %v324_v49 = vadd.f32 %v472_v47, %v323_v48  ;;  %v548_v50 = vpop.f32.mrb[1].mxu1 }
 0x1d6   :  { %v326_v51 = vpop.f32.mrb[2].mxu1 }
 0x1d7   :  { %v327_v52 = vadd.f32 %v472_v47, %v326_v51  ;;  %v549_v53 = vpop.f32.mrb[3].mxu1  ;;  %v330_v54 = vmax.f32 %v324_v49, 0.0 }
 0x1d9   :  { %v331_v55 = vmax.f32 %v327_v52, 0.0 }
 0x1db   :  { %v332_v56 = vpack.c.bf16 %v331_v55, %v330_v54 }
 0x1dd   :  { %567 = vmatmul.mubr.bf16.vlgmr.msra.gmra.mrb[4].mxu0 %v332_v56 }
 0x2b0   :  { %v438_v58 = vpop.f32.mrb[4].mxu0 }
 0x2b1   :  { %v439_v59 = vadd.f32 %v481_v57, %v438_v58  ;;  %v568_v60 = vpop.f32.mrb[5].mxu0 }
 0x2b2   :  { %v441_v61 = vpop.f32.mrb[6].mxu0 }
 0x2b3   :  { %v445_v62 = vmax.f32 %v439_v59, 0.0  ;;  %v442_v63 = vadd.f32 %v481_v57, %v441_v61  ;;  %v569_v0 = vpop.f32.mrb[7].mxu0 }
 0x2b5   :  { %447 = vst [vmem:[%s791_s7] sm:$0xff] %v445_v62  ;;  %v446_v1 = vmax.f32 %v442_v63, 0.0 }
 0x2b7   :  { %448 = vst [vmem:[%s791_s7 + $0x8] sm:$0xff] %v446_v1 }

</bundles_post_ra>
